<compile_context>
chip_gen: v6e
topology: v6e:2x2x1
jax: 0.10.0
libtpu: 0.0.40
codegen_flags: <defaults>
</compile_context>

<pallas_src>
import functools

import jax
import jax.numpy as jnp
from jax import lax
from jax.experimental import pallas as pl
from jax.experimental.pallas import tpu as pltpu


# ----------------------------------------------------------------------------
# Kernel: top-k mask along the channel (sublane) axis of a (C, TILE_HW) block.
#
# rank[c, t] = #{c' : x[c',t] > x[c,t]} + #{c' < c : x[c',t] == x[c,t]}
# keep[c, t] = rank[c, t] < k        -> exactly k kept per spatial location,
#                                       ties broken toward the lowest index
#                                       (matches torch.topk + scatter mask).
# ----------------------------------------------------------------------------
def topk_mask_kernel(x_ref, o_ref, *, k, num_channels):
    x = jnp.maximum(x_ref[...].astype(jnp.float32), 0.0)      # ReLU, (C, T)
    cidx = lax.broadcasted_iota(jnp.int32, x.shape, 0)         # channel index (hoisted)
    rank = jnp.zeros(x.shape, dtype=jnp.int32)
    # Static unroll over channels: ~5 VPU ops per iteration, no XLU reductions,
    # no serial max-extraction dependency chain.
    for cp in range(num_channels):
        row = lax.slice_in_dim(x, cp, cp + 1, axis=0)          # (1, T) sublane bcast
        beats = (row > x) | ((row == x) & (cidx > cp))
        rank = rank + beats.astype(jnp.int32)
    keep = rank < k
    o_ref[...] = jnp.where(keep, x, 0.0).astype(o_ref.dtype)


# ----------------------------------------------------------------------------
# Wrapper: NCHW -> (N, C, H*W) view (free reshape, no transpose) + pallas_call
# ----------------------------------------------------------------------------
def top_k_act(x_nchw, k, *, max_tile_hw=2048):
    N, C, H, W = x_nchw.shape
    HW = H * W
    x3 = x_nchw.reshape(N, C, HW)

    # Pad the spatial (lane) axis to a multiple of 128 so stores are unmasked.
    HW_pad = ((HW + 127) // 128) * 128
    if HW_pad != HW:
        x3 = jnp.pad(x3, ((0, 0), (0, 0), (0, HW_pad - HW)))

    # Largest lane-dense tile (multiple of 128) dividing HW_pad, capped so the
    # double-buffered block stays comfortably inside scoped VMEM.
    tile_hw = min(HW_pad, max_tile_hw)
    while HW_pad % tile_hw != 0:
        tile_hw -= 128

    grid = (N, HW_pad // tile_hw)

    out3 = pl.pallas_call(
        functools.partial(topk_mask_kernel, k=k, num_channels=C),
        out_shape=jax.ShapeDtypeStruct((N, C, HW_pad), x3.dtype),
        grid_spec=pltpu.PrefetchScalarGridSpec(
            num_scalar_prefetch=0,
            grid=grid,
            in_specs=[pl.BlockSpec((None, C, tile_hw), lambda n, h: (n, 0, h))],
            out_specs=pl.BlockSpec((None, C, tile_hw), lambda n, h: (n, 0, h)),
        ),
        compiler_params=pltpu.CompilerParams(
            dimension_semantics=("parallel", "parallel")),
    )(x3)

    if HW_pad != HW:
        out3 = out3[:, :, :HW]
    return out3.reshape(N, C, H, W)


# ----------------------------------------------------------------------------
# Host-side k schedule (Top_K.get_curr_k for 'LINEAR_DECAY_MASK')
# ----------------------------------------------------------------------------
def get_curr_k(k_max, k_min, k_transition_epochs, curr_ep):
    linear_coef = -(k_max - k_min) / k_transition_epochs
    k = min(k_max, max(k_max + linear_coef * curr_ep, k_min))
    return int(k)


# Pure-JAX reference with exact torch.topk+scatter semantics (exactly k kept,
# lowest-index tie-break via lax.top_k + one-hot scatter).
def top_k_act_ref(x_nchw, k):
    x = jnp.maximum(x_nchw, 0.0)
    xt = jnp.moveaxis(x, 1, -1)                          # N,H,W,C
    _, inds = lax.top_k(xt, k)                           # ties -> lower index
    mask = jax.nn.one_hot(inds, xt.shape[-1], dtype=xt.dtype).sum(axis=-2)
    out = xt * mask
    return jnp.moveaxis(out, -1, 1)


if __name__ == "__main__":
    # Deterministic config (stands in for the `params` object)
    k_min, k_transition_epochs, curr_ep = 2, 7, 3
    N, C, H, W = 2, 16, 16, 16                           # NCHW; nneurons = C = 16
    k_max = C                                            # params.k_max is None
    curr_k = get_curr_k(k_max, k_min, k_transition_epochs, curr_ep)   # -> 10
    k = min(curr_k, k_max)

    key = jax.random.PRNGKey(0)
    x = jax.random.normal(key, (N, C, H, W), dtype=jnp.float32)

    out = top_k_act(x, k)
    out = jax.block_until_ready(out)

    ref = top_k_act_ref(x, k)
    assert out.shape == x.shape and out.dtype == x.dtype
    assert jnp.allclose(out, ref, atol=1e-6, rtol=1e-6), "mismatch vs reference"

    print("KERNEL_OK")
</pallas_src>

<mosaic_0001>
module attributes {stable_mosaic.version = 11 : i64} {
  func.func @topk_mask_kernel(%arg0: i32, %arg1: i32, %arg2: memref<1x16x256xf32, #tpu.memory_space<vmem>>, %arg3: memref<1x16x256xf32, #tpu.memory_space<vmem>>) attributes {dimension_semantics = [#tpu.dimension_semantics<parallel>, #tpu.dimension_semantics<parallel>], iteration_bounds = array<i64: 2, 1>, scalar_prefetch = 0 : i64, scratch_operands = 0 : i64, tpu.core_type = #tpu.core_type<tc>, window_params = [{transform_indices = @transform_0, window_bounds = array<i64: 1, 16, 256>}, {transform_indices = @transform_1, window_bounds = array<i64: 1, 16, 256>}]} {
    %c0 = arith.constant 0 : index
    %c0_0 = arith.constant 0 : index
    %c0_1 = arith.constant 0 : index
    %0 = vector.load %arg2[%c0, %c0_0, %c0_1] : memref<1x16x256xf32, #tpu.memory_space<vmem>>, vector<1x16x256xf32>
    %1 = vector.shape_cast %0 : vector<1x16x256xf32> to vector<16x256xf32>
    %cst = arith.constant 0.000000e+00 : f32
    %2 = vector.broadcast %cst : f32 to vector<16x256xf32>
    %3 = arith.maximumf %1, %2 : vector<16x256xf32>
    %4 = tpu.iota {dimensions = array<i32: 0>} : vector<16x256xi32>
    %c0_i32 = arith.constant 0 : i32
    %5 = vector.broadcast %c0_i32 : i32 to vector<16x256xi32>
    %6 = vector.extract_strided_slice %3 {offsets = [0, 0], sizes = [1, 256], strides = [1, 1]} : vector<16x256xf32> to vector<1x256xf32>
    %7 = vector.broadcast %6 : vector<1x256xf32> to vector<16x256xf32>
    %8 = arith.cmpf ogt, %7, %3 : vector<16x256xf32>
    %9 = vector.broadcast %6 : vector<1x256xf32> to vector<16x256xf32>
    %10 = arith.cmpf oeq, %9, %3 : vector<16x256xf32>
    %c0_i32_2 = arith.constant 0 : i32
    %11 = vector.broadcast %c0_i32_2 : i32 to vector<16x256xi32>
    %12 = arith.cmpi sgt, %4, %11 : vector<16x256xi32>
    %13 = arith.andi %10, %12 : vector<16x256xi1>
    %14 = arith.ori %8, %13 : vector<16x256xi1>
    %15 = arith.extui %14 : vector<16x256xi1> to vector<16x256xi32>
    %16 = arith.addi %5, %15 : vector<16x256xi32>
    %17 = vector.extract_strided_slice %3 {offsets = [1, 0], sizes = [1, 256], strides = [1, 1]} : vector<16x256xf32> to vector<1x256xf32>
    %18 = vector.broadcast %17 : vector<1x256xf32> to vector<16x256xf32>
    %19 = arith.cmpf ogt, %18, %3 : vector<16x256xf32>
    %20 = vector.broadcast %17 : vector<1x256xf32> to vector<16x256xf32>
    %21 = arith.cmpf oeq, %20, %3 : vector<16x256xf32>
    %c1_i32 = arith.constant 1 : i32
    %22 = vector.broadcast %c1_i32 : i32 to vector<16x256xi32>
    %23 = arith.cmpi sgt, %4, %22 : vector<16x256xi32>
    %24 = arith.andi %21, %23 : vector<16x256xi1>
    %25 = arith.ori %19, %24 : vector<16x256xi1>
    %26 = arith.extui %25 : vector<16x256xi1> to vector<16x256xi32>
    %27 = arith.addi %16, %26 : vector<16x256xi32>
    %28 = vector.extract_strided_slice %3 {offsets = [2, 0], sizes = [1, 256], strides = [1, 1]} : vector<16x256xf32> to vector<1x256xf32>
    %29 = vector.broadcast %28 : vector<1x256xf32> to vector<16x256xf32>
    %30 = arith.cmpf ogt, %29, %3 : vector<16x256xf32>
    %31 = vector.broadcast %28 : vector<1x256xf32> to vector<16x256xf32>
    %32 = arith.cmpf oeq, %31, %3 : vector<16x256xf32>
    %c2_i32 = arith.constant 2 : i32
    %33 = vector.broadcast %c2_i32 : i32 to vector<16x256xi32>
    %34 = arith.cmpi sgt, %4, %33 : vector<16x256xi32>
    %35 = arith.andi %32, %34 : vector<16x256xi1>
    %36 = arith.ori %30, %35 : vector<16x256xi1>
    %37 = arith.extui %36 : vector<16x256xi1> to vector<16x256xi32>
    %38 = arith.addi %27, %37 : vector<16x256xi32>
    %39 = vector.extract_strided_slice %3 {offsets = [3, 0], sizes = [1, 256], strides = [1, 1]} : vector<16x256xf32> to vector<1x256xf32>
    %40 = vector.broadcast %39 : vector<1x256xf32> to vector<16x256xf32>
    %41 = arith.cmpf ogt, %40, %3 : vector<16x256xf32>
    %42 = vector.broadcast %39 : vector<1x256xf32> to vector<16x256xf32>
    %43 = arith.cmpf oeq, %42, %3 : vector<16x256xf32>
    %c3_i32 = arith.constant 3 : i32
    %44 = vector.broadcast %c3_i32 : i32 to vector<16x256xi32>
    %45 = arith.cmpi sgt, %4, %44 : vector<16x256xi32>
    %46 = arith.andi %43, %45 : vector<16x256xi1>
    %47 = arith.ori %41, %46 : vector<16x256xi1>
    %48 = arith.extui %47 : vector<16x256xi1> to vector<16x256xi32>
    %49 = arith.addi %38, %48 : vector<16x256xi32>
    %50 = vector.extract_strided_slice %3 {offsets = [4, 0], sizes = [1, 256], strides = [1, 1]} : vector<16x256xf32> to vector<1x256xf32>
    %51 = vector.broadcast %50 : vector<1x256xf32> to vector<16x256xf32>
    %52 = arith.cmpf ogt, %51, %3 : vector<16x256xf32>
    %53 = vector.broadcast %50 : vector<1x256xf32> to vector<16x256xf32>
    %54 = arith.cmpf oeq, %53, %3 : vector<16x256xf32>
    %c4_i32 = arith.constant 4 : i32
    %55 = vector.broadcast %c4_i32 : i32 to vector<16x256xi32>
    %56 = arith.cmpi sgt, %4, %55 : vector<16x256xi32>
    %57 = arith.andi %54, %56 : vector<16x256xi1>
    %58 = arith.ori %52, %57 : vector<16x256xi1>
    %59 = arith.extui %58 : vector<16x256xi1> to vector<16x256xi32>
    %60 = arith.addi %49, %59 : vector<16x256xi32>
    %61 = vector.extract_strided_slice %3 {offsets = [5, 0], sizes = [1, 256], strides = [1, 1]} : vector<16x256xf32> to vector<1x256xf32>
    %62 = vector.broadcast %61 : vector<1x256xf32> to vector<16x256xf32>
    %63 = arith.cmpf ogt, %62, %3 : vector<16x256xf32>
    %64 = vector.broadcast %61 : vector<1x256xf32> to vector<16x256xf32>
    %65 = arith.cmpf oeq, %64, %3 : vector<16x256xf32>
    %c5_i32 = arith.constant 5 : i32
    %66 = vector.broadcast %c5_i32 : i32 to vector<16x256xi32>
    %67 = arith.cmpi sgt, %4, %66 : vector<16x256xi32>
    %68 = arith.andi %65, %67 : vector<16x256xi1>
    %69 = arith.ori %63, %68 : vector<16x256xi1>
    %70 = arith.extui %69 : vector<16x256xi1> to vector<16x256xi32>
    %71 = arith.addi %60, %70 : vector<16x256xi32>
    %72 = vector.extract_strided_slice %3 {offsets = [6, 0], sizes = [1, 256], strides = [1, 1]} : vector<16x256xf32> to vector<1x256xf32>
    %73 = vector.broadcast %72 : vector<1x256xf32> to vector<16x256xf32>
    %74 = arith.cmpf ogt, %73, %3 : vector<16x256xf32>
    %75 = vector.broadcast %72 : vector<1x256xf32> to vector<16x256xf32>
    %76 = arith.cmpf oeq, %75, %3 : vector<16x256xf32>
    %c6_i32 = arith.constant 6 : i32
    %77 = vector.broadcast %c6_i32 : i32 to vector<16x256xi32>
    %78 = arith.cmpi sgt, %4, %77 : vector<16x256xi32>
    %79 = arith.andi %76, %78 : vector<16x256xi1>
    %80 = arith.ori %74, %79 : vector<16x256xi1>
    %81 = arith.extui %80 : vector<16x256xi1> to vector<16x256xi32>
    %82 = arith.addi %71, %81 : vector<16x256xi32>
    %83 = vector.extract_strided_slice %3 {offsets = [7, 0], sizes = [1, 256], strides = [1, 1]} : vector<16x256xf32> to vector<1x256xf32>
    %84 = vector.broadcast %83 : vector<1x256xf32> to vector<16x256xf32>
    %85 = arith.cmpf ogt, %84, %3 : vector<16x256xf32>
    %86 = vector.broadcast %83 : vector<1x256xf32> to vector<16x256xf32>
    %87 = arith.cmpf oeq, %86, %3 : vector<16x256xf32>
    %c7_i32 = arith.constant 7 : i32
    %88 = vector.broadcast %c7_i32 : i32 to vector<16x256xi32>
    %89 = arith.cmpi sgt, %4, %88 : vector<16x256xi32>
    %90 = arith.andi %87, %89 : vector<16x256xi1>
    %91 = arith.ori %85, %90 : vector<16x256xi1>
    %92 = arith.extui %91 : vector<16x256xi1> to vector<16x256xi32>
    %93 = arith.addi %82, %92 : vector<16x256xi32>
    %94 = vector.extract_strided_slice %3 {offsets = [8, 0], sizes = [1, 256], strides = [1, 1]} : vector<16x256xf32> to vector<1x256xf32>
    %95 = vector.broadcast %94 : vector<1x256xf32> to vector<16x256xf32>
    %96 = arith.cmpf ogt, %95, %3 : vector<16x256xf32>
    %97 = vector.broadcast %94 : vector<1x256xf32> to vector<16x256xf32>
    %98 = arith.cmpf oeq, %97, %3 : vector<16x256xf32>
    %c8_i32 = arith.constant 8 : i32
    %99 = vector.broadcast %c8_i32 : i32 to vector<16x256xi32>
    %100 = arith.cmpi sgt, %4, %99 : vector<16x256xi32>
    %101 = arith.andi %98, %100 : vector<16x256xi1>
    %102 = arith.ori %96, %101 : vector<16x256xi1>
    %103 = arith.extui %102 : vector<16x256xi1> to vector<16x256xi32>
    %104 = arith.addi %93, %103 : vector<16x256xi32>
    %105 = vector.extract_strided_slice %3 {offsets = [9, 0], sizes = [1, 256], strides = [1, 1]} : vector<16x256xf32> to vector<1x256xf32>
    %106 = vector.broadcast %105 : vector<1x256xf32> to vector<16x256xf32>
    %107 = arith.cmpf ogt, %106, %3 : vector<16x256xf32>
    %108 = vector.broadcast %105 : vector<1x256xf32> to vector<16x256xf32>
    %109 = arith.cmpf oeq, %108, %3 : vector<16x256xf32>
    %c9_i32 = arith.constant 9 : i32
    %110 = vector.broadcast %c9_i32 : i32 to vector<16x256xi32>
    %111 = arith.cmpi sgt, %4, %110 : vector<16x256xi32>
    %112 = arith.andi %109, %111 : vector<16x256xi1>
    %113 = arith.ori %107, %112 : vector<16x256xi1>
    %114 = arith.extui %113 : vector<16x256xi1> to vector<16x256xi32>
    %115 = arith.addi %104, %114 : vector<16x256xi32>
    %116 = vector.extract_strided_slice %3 {offsets = [10, 0], sizes = [1, 256], strides = [1, 1]} : vector<16x256xf32> to vector<1x256xf32>
    %117 = vector.broadcast %116 : vector<1x256xf32> to vector<16x256xf32>
    %118 = arith.cmpf ogt, %117, %3 : vector<16x256xf32>
    %119 = vector.broadcast %116 : vector<1x256xf32> to vector<16x256xf32>
    %120 = arith.cmpf oeq, %119, %3 : vector<16x256xf32>
    %c10_i32 = arith.constant 10 : i32
    %121 = vector.broadcast %c10_i32 : i32 to vector<16x256xi32>
    %122 = arith.cmpi sgt, %4, %121 : vector<16x256xi32>
    %123 = arith.andi %120, %122 : vector<16x256xi1>
    %124 = arith.ori %118, %123 : vector<16x256xi1>
    %125 = arith.extui %124 : vector<16x256xi1> to vector<16x256xi32>
    %126 = arith.addi %115, %125 : vector<16x256xi32>
    %127 = vector.extract_strided_slice %3 {offsets = [11, 0], sizes = [1, 256], strides = [1, 1]} : vector<16x256xf32> to vector<1x256xf32>
    %128 = vector.broadcast %127 : vector<1x256xf32> to vector<16x256xf32>
    %129 = arith.cmpf ogt, %128, %3 : vector<16x256xf32>
    %130 = vector.broadcast %127 : vector<1x256xf32> to vector<16x256xf32>
    %131 = arith.cmpf oeq, %130, %3 : vector<16x256xf32>
    %c11_i32 = arith.constant 11 : i32
    %132 = vector.broadcast %c11_i32 : i32 to vector<16x256xi32>
    %133 = arith.cmpi sgt, %4, %132 : vector<16x256xi32>
    %134 = arith.andi %131, %133 : vector<16x256xi1>
    %135 = arith.ori %129, %134 : vector<16x256xi1>
    %136 = arith.extui %135 : vector<16x256xi1> to vector<16x256xi32>
    %137 = arith.addi %126, %136 : vector<16x256xi32>
    %138 = vector.extract_strided_slice %3 {offsets = [12, 0], sizes = [1, 256], strides = [1, 1]} : vector<16x256xf32> to vector<1x256xf32>
    %139 = vector.broadcast %138 : vector<1x256xf32> to vector<16x256xf32>
    %140 = arith.cmpf ogt, %139, %3 : vector<16x256xf32>
    %141 = vector.broadcast %138 : vector<1x256xf32> to vector<16x256xf32>
    %142 = arith.cmpf oeq, %141, %3 : vector<16x256xf32>
    %c12_i32 = arith.constant 12 : i32
    %143 = vector.broadcast %c12_i32 : i32 to vector<16x256xi32>
    %144 = arith.cmpi sgt, %4, %143 : vector<16x256xi32>
    %145 = arith.andi %142, %144 : vector<16x256xi1>
    %146 = arith.ori %140, %145 : vector<16x256xi1>
    %147 = arith.extui %146 : vector<16x256xi1> to vector<16x256xi32>
    %148 = arith.addi %137, %147 : vector<16x256xi32>
    %149 = vector.extract_strided_slice %3 {offsets = [13, 0], sizes = [1, 256], strides = [1, 1]} : vector<16x256xf32> to vector<1x256xf32>
    %150 = vector.broadcast %149 : vector<1x256xf32> to vector<16x256xf32>
    %151 = arith.cmpf ogt, %150, %3 : vector<16x256xf32>
    %152 = vector.broadcast %149 : vector<1x256xf32> to vector<16x256xf32>
    %153 = arith.cmpf oeq, %152, %3 : vector<16x256xf32>
    %c13_i32 = arith.constant 13 : i32
    %154 = vector.broadcast %c13_i32 : i32 to vector<16x256xi32>
    %155 = arith.cmpi sgt, %4, %154 : vector<16x256xi32>
    %156 = arith.andi %153, %155 : vector<16x256xi1>
    %157 = arith.ori %151, %156 : vector<16x256xi1>
    %158 = arith.extui %157 : vector<16x256xi1> to vector<16x256xi32>
    %159 = arith.addi %148, %158 : vector<16x256xi32>
    %160 = vector.extract_strided_slice %3 {offsets = [14, 0], sizes = [1, 256], strides = [1, 1]} : vector<16x256xf32> to vector<1x256xf32>
    %161 = vector.broadcast %160 : vector<1x256xf32> to vector<16x256xf32>
    %162 = arith.cmpf ogt, %161, %3 : vector<16x256xf32>
    %163 = vector.broadcast %160 : vector<1x256xf32> to vector<16x256xf32>
    %164 = arith.cmpf oeq, %163, %3 : vector<16x256xf32>
    %c14_i32 = arith.constant 14 : i32
    %165 = vector.broadcast %c14_i32 : i32 to vector<16x256xi32>
    %166 = arith.cmpi sgt, %4, %165 : vector<16x256xi32>
    %167 = arith.andi %164, %166 : vector<16x256xi1>
    %168 = arith.ori %162, %167 : vector<16x256xi1>
    %169 = arith.extui %168 : vector<16x256xi1> to vector<16x256xi32>
    %170 = arith.addi %159, %169 : vector<16x256xi32>
    %171 = vector.extract_strided_slice %3 {offsets = [15, 0], sizes = [1, 256], strides = [1, 1]} : vector<16x256xf32> to vector<1x256xf32>
    %172 = vector.broadcast %171 : vector<1x256xf32> to vector<16x256xf32>
    %173 = arith.cmpf ogt, %172, %3 : vector<16x256xf32>
    %174 = vector.broadcast %171 : vector<1x256xf32> to vector<16x256xf32>
    %175 = arith.cmpf oeq, %174, %3 : vector<16x256xf32>
    %c15_i32 = arith.constant 15 : i32
    %176 = vector.broadcast %c15_i32 : i32 to vector<16x256xi32>
    %177 = arith.cmpi sgt, %4, %176 : vector<16x256xi32>
    %178 = arith.andi %175, %177 : vector<16x256xi1>
    %179 = arith.ori %173, %178 : vector<16x256xi1>
    %180 = arith.extui %179 : vector<16x256xi1> to vector<16x256xi32>
    %181 = arith.addi %170, %180 : vector<16x256xi32>
    %c10_i32_3 = arith.constant 10 : i32
    %182 = vector.broadcast %c10_i32_3 : i32 to vector<16x256xi32>
    %183 = arith.cmpi slt, %181, %182 : vector<16x256xi32>
    %cst_4 = arith.constant 0.000000e+00 : f32
    %184 = vector.broadcast %cst_4 : f32 to vector<16x256xf32>
    %185 = arith.select %183, %3, %184 : vector<16x256xi1>, vector<16x256xf32>
    %c0_5 = arith.constant 0 : index
    %c0_6 = arith.constant 0 : index
    %c0_7 = arith.constant 0 : index
    %186 = vector.load %arg3[%c0_5, %c0_6, %c0_7] : memref<1x16x256xf32, #tpu.memory_space<vmem>>, vector<1x16x256xf32>
    %187 = vector.shape_cast %186 : vector<1x16x256xf32> to vector<16x256xf32>
    %188 = vector.shape_cast %185 : vector<16x256xf32> to vector<1x16x256xf32>
    tpu.vector_store %arg3[%c0_5, %c0_6, %c0_7], %188 {strides = array<i32>} : memref<1x16x256xf32, #tpu.memory_space<vmem>>, vector<1x16x256xf32>,
    return
  }
  func.func @transform_0(%arg0: i32, %arg1: i32) -> (i32, i32, i32) {
    %c0_i32 = arith.constant 0 : i32
    %c0_i32_0 = arith.constant 0 : i32
    return %arg0, %c0_i32, %arg1 : i32, i32, i32
  }
  func.func @transform_1(%arg0: i32, %arg1: i32) -> (i32, i32, i32) {
    %c0_i32 = arith.constant 0 : i32
    %c0_i32_0 = arith.constant 0 : i32
    return %arg0, %c0_i32, %arg1 : i32, i32, i32
  }
}

</mosaic_0001>

<bundles_post_ra>
// kernel: tpu_custom_call.1
= control target key start
LH: loop header
LB: loop body
LE: loop exit
PB: predicated region body
PF: predicated region fallthrough
CT: control target
= control target key end

     0   :  { %6 = vsyncpa [#allocation3], 0  ;;  %s1997_s0 = inlined_call_operand.hbm [shape: f32[2,16,256], index: 0, kind: input, shape index: {}]   ;;  %s1998_s1 = inlined_call_operand.hbm [shape: f32[2,16,256], index: 1, kind: output, shape index: {}]  }
   0x1   :  { %8 = vsyncpa [#allocation3 + $0x1], 0 }
   0x2   :  { %9 = vsyncpa [#allocation4], 0 }
   0x3   :  { %11 = vsyncpa [#allocation4 + $0x1], 0  ;;  %s1032_s6 = smov 0   ;;  %s1034_s7 = smov 0  }
   0x4   :  { %s1036_s8 = smov 0   ;;  %s1038_s9 = smov 0  }
   0x5   :  { %s1040_s10 = smov 0   ;;  %s1042_s11 = smov 0  }
   0x6 LB: > { %s821_s12 = sadd.s32 4294967295, %s1013_s11   ;;  %s822_s13 = sadd.s32 4294967294, %s1013_s11   ;;  %s1013_s11 = sphi %s1042_s11, %s17_s11   ;;  %s1009_s10 = sphi %s1040_s10, %s2090_s10   ;;  %s1005_s9 = sphi %s1038_s9, %s2089_s9   ;;  %s1001_s8 = sphi %s1036_s8, %s2088_s8   ;;  %s997_s7 = sphi %s1034_s7, %s2087_s7   ;;  %s993_s6 = sphi %s1032_s6, %s2086_s6  }
   0x7   : > { %s29_s14 = sadd.s32 1, %s1009_s10  ;;  %s38_s15 = sadd.s32 1, %s1001_s8 }
   0x8   : > { %p31_p0 = scmp.ge.s32.totalorder %s29_s14, 2  ;;  %p45_p1 = scmp.ne.s32.totalorder %s1001_s8, %s997_s7 }
   0x9   : > { %p46_p2 = scmp.eq.s32.totalorder %s1013_s11, 0  ;;  %p51_p3 = scmp.ne.s32.totalorder %s997_s7, %s993_s6 }
   0xa   : > { %s2092_s14 = smov (%p31_p0, %s29_s14), 0  ;;  %p52_p5 = scmp.eq.s32.totalorder %s821_s12, 0 }
   0xb   : > { %p1073_p4 = por %p46_p2, %p45_p1  ;;  %s33_s17 = ssub.s32 %s1009_s10, %s2092_s14 }
   0xc   : > { %p77_p6 = scmp.eq.s32.totalorder %s821_s12, 1  ;;  %p36_p7 = scmp.eq.s32.totalorder %s33_s17, 0 }
   0xd   : > { %p1079_p8 = por %p52_p5, %p51_p3  ;;  %p83_p10 = scmp.eq.s32.totalorder %s822_s13, 1 }
   0xe   : > { %p1083_p9 = por %p77_p6, %p45_p1  ;;  %p850_p13 = scmp.lt.s32.totalorder %s1013_s11, 2 }
   0xf   : > { %s1088_s20 = scalar_select %p36_p7, %s1001_s8, %s38_s15  }
  0x10   : > { %p1090_p11 = por %p83_p10, %p51_p3  ;;  %s103_s22 = sand.u32 1, %s1001_s8  }
  0x11   : > { %s825_s23 = sshll.u32 %s103_s22, 5  ;;  %s836_s24 = sshll.u32 %s1009_s10, 9 }
  0x12   : > { %s115_s27 = scalar_lea.hbm %s1997_s0, %s836_s24  ;;  %s107_s28 = scalar_lea.vmem [#allocation2], %s825_s23 }
  0x13   : > { %s116_s29 = sshll.u32 %s107_s28, 4  ;;  %p1103_p0 = pnand %p850_p13, %p1073_p4  ;;  %s117_s29 = int_to_ptr.vmem [resolvable:$true] %s116_s29 }
  0x14   : > { %p828_p1 = scmp.ge.s32.totalorder %s1013_s11, 1  ;;  %s104_s2 = scalar_lea.sflag [#allocation3], %s103_s22 }
  0x15   : > { %p907_p2 = pneg %p1103_p0  ;;  %s918_s3 = scalar_lea.vmem %s117_s29, 512 }
  0x16   : > { %p919_p3 = scmp.ne.s32.totalorder %s117_s29, %s918_s3  ;;  %s1015_s4 = smov [#allocation2]  }
  0x17   : > { %s923_s5 = sshll.u32 %s1015_s4, 4  ;;  %s924_s5 = int_to_ptr.vmem [resolvable:$false] %s923_s5 }
  0x18   : > { %p921_p5 = pnand %p919_p3, %p907_p2  ;;  %s925_s12 = scalar_lea.vmem %s924_s5, 1024 }
  0x19   : > { %p926_p7 = scmp.lt.s32.totalorder %s117_s29, %s924_s5  ;;  %p927_p10 = scmp.lt.s32.totalorder %s925_s12, %s918_s3 }
  0x1a   : > { %p922_p6 = pneg %p921_p5 }
  0x1b   : > { %p928_p12 = por %p927_p10, %p926_p7 }
  0x1d   : > { %p929_p4 = pnand %p928_p12, %p922_p6 }
  0x1f   : > { %932 = shalt.err (!%p929_p4)
}
  0x20   : > { %s1016_s13 = smov 256   ;;  %s1017_s15 = smov 16  }
  0x21   : > { %845 = dma.hbm_to_vmem [thread:$0]  (!%p1103_p0), %s115_s27, 512, %s117_s29, %s104_s2, %s1016_s13, %s1016_s13, %s1017_s15  }
  0x22   : > { %p124_p13 = scmp.lt.s32.totalorder %s1013_s11, 3 }
  0x24   : > { %p125_p2 = pnand %p828_p1, %p124_p13 }
  0x25   : > { %s1116_s16 = sand.u32 (!%p125_p2), 1, %s997_s7  }
  0x26   : > { %128 = sbr.rel (%p125_p2) target bundleno = 153 (0x99), region = 24  ;;  %s829_s17 = sshll.u32 (!%p125_p2), %s1116_s16, 5 }
  0x27   : > { %s131_s22 = scalar_lea.sflag (!%p125_p2), [#allocation3], %s1116_s16  ;;  %s134_s23 = scalar_lea.vmem (!%p125_p2), [#allocation2], %s829_s17 }
  0x2b   : > { %984 = dma.done.wait (%p1079_p8), %s131_s22, 512  }
  0x2c   : > { %986 = vsyncadd (%p1079_p8), %s131_s22, 4294966784  ;;  %v163_v0 = vlaneseq  ;;  %v155_v3 = vld [vmem:[%s134_s23] sm:$0xff]  ;;  %v156_v4 = vld [vmem:[%s134_s23 + $0x8] sm:$0xff]  ;;  %v2008_v19 = vmov 0  ;;  %v2010_v20 = vmov 0  ;;  %v1018_v35 = vmov 0  }
  0x2d   : > { %v157_v5 = vld [vmem:[%s134_s23 + $0x10] sm:$0xff]  ;;  %v1131_v6 = vmax.f32 %v155_v3, 0.0  ;;  %v1133_v7 = vmax.f32 %v156_v4, 0.0  ;;  %v158_v8 = vld [vmem:[%s134_s23 + $0x18] sm:$0xff]  ;;  %s1899_s18 = scalar_lea.vmem [#allocation5], %s829_s17  ;;  %s837_s24 = sshll.u32 %s1005_s9, 9 }
  0x2e   : > { %v1126_v1 = vshrl.u32 %v163_v0, 7  ;;  %v1142_v12 = vmax.f32 %v157_v5, 0.0  ;;  %v1145_v13 = vmax.f32 %v158_v8, 0.0  ;;  %s734_s25 = sshll.u32 %s1899_s18, 4  ;;  %s1943_s28 = scalar_lea.hbm %s1998_s1, %s837_s24  ;;  %s1945_s25 = int_to_ptr.vmem [resolvable:$true] %s734_s25 }
  0x2f   : > { %s719_s9 = scalar_lea.sflag [#allocation4], %s1116_s16  ;;  %s933_s29 = scalar_lea.vmem %s1945_s25, 512 }
  0x30   : > { %v1129_v2 = vsub.s32 0, %v1126_v1  ;;  %v1136_v9 = vsub.s32 1, %v1126_v1  ;;  %vm182_vm0 = vcmp.gt.s32.totalorder %v1126_v1, 0  ;;  %v1158_v16 = vsub.s32 2, %v1126_v1  ;;  %p934_p8 = scmp.ne.s32.totalorder %s1945_s25, %s933_s29  ;;  %s1019_s30 = smov [#allocation5]  }
  0x31   : > { %vm212_vm14 = vcmp.gt.s32.totalorder %v1126_v1, 1  ;;  %v1188_v23 = vsub.s32 3, %v1126_v1  ;;  %v1199_v25 = vadd.s32 8, %v1126_v1  ;;  %v1227_v31 = vsub.s32 4, %v1126_v1  ;;  %s937_s2 = sshll.u32 %s1019_s30, 4  ;;  %s938_s2 = int_to_ptr.vmem [resolvable:$false] %s937_s2 }
  0x32   : > { %v169_v10 = vrot.slane %v1131_v6, %v1129_v2  ;;  %v173_v11 = vrot.slane %v1133_v7, %v1129_v2  ;;  %v199_v14 = vrot.slane %v1131_v6, %v1136_v9  ;;  %v203_v15 = vrot.slane %v1133_v7, %v1136_v9  ;;  %p935_p12 = pnand %p934_p8, %p1083_p9  ;;  %s939_s3 = scalar_lea.vmem %s938_s2, 1024 }
  0x33   : > { %v233_v21 = vrot.slane %v1131_v6, %v1158_v16  ;;  %v237_v22 = vrot.slane %v1133_v7, %v1158_v16  ;;  %v1214_v28 = vrot.slane %v1131_v6, %v1188_v23  ;;  %v1218_v29 = vrot.slane %v1133_v7, %v1188_v23  ;;  %p940_p1 = scmp.lt.s32.totalorder %s1945_s25, %s938_s2  ;;  %p941_p3 = scmp.lt.s32.totalorder %s939_s3, %s933_s29 }
  0x34   : > { %vm174_vm1 = vcmp.gt.f32.partialorder %v169_v10, %v1131_v6  ;;  %vm178_vm2 = vcmp.eq.f32.partialorder %v169_v10, %v1131_v6  ;;  %vm179_vm3 = vcmp.eq.f32.partialorder %v173_v11, %v1133_v7  ;;  %vm175_vm4 = vcmp.gt.f32.partialorder %v173_v11, %v1133_v7  ;;  %p936_p0 = pneg %p935_p12 }
  0x35   : > { %vm184_vm5 = vmand %vm178_vm2, %vm182_vm0  ;;  %vm176_vm6 = vcmp.gt.f32.partialorder %v169_v10, %v1142_v12  ;;  %vm180_vm7 = vcmp.eq.f32.partialorder %v169_v10, %v1142_v12  ;;  %vm177_vm9 = vcmp.gt.f32.partialorder %v173_v11, %v1145_v13  ;;  %vm181_vm10 = vcmp.eq.f32.partialorder %v173_v11, %v1145_v13  ;;  %p942_p5 = por %p941_p3, %p940_p1 }
  0x36   : > { %vm185_vm8 = vmand %vm179_vm3, %vm182_vm0  ;;  %vm208_vm13 = vcmp.eq.f32.partialorder %v199_v14, %v1131_v6  ;;  %vm209_vm0 = vcmp.eq.f32.partialorder %v203_v15, %v1133_v7  ;;  %vm205_vm3 = vcmp.gt.f32.partialorder %v203_v15, %v1133_v7  ;;  %v1230_v32 = vsub.s32 5, %v1126_v1 }
  0x37   : > { %vm1162_vm11 = vmor %vm174_vm1, %vm184_vm5  ;;  %vm204_vm1 = vcmp.gt.f32.partialorder %v199_v14, %v1131_v6  ;;  %vm206_vm5 = vcmp.gt.f32.partialorder %v199_v14, %v1142_v12  ;;  %v1233_v33 = vsub.s32 6, %v1126_v1  ;;  %v1243_v34 = vsub.s32 7, %v1126_v1  ;;  %p943_p6 = pnand %p942_p5, %p936_p0 }
  0x38   : > { %vm1166_vm12 = vmor %vm175_vm4, %vm185_vm8  ;;  %vm207_vm8 = vcmp.gt.f32.partialorder %v203_v15, %v1145_v13  ;;  %v192_v36 = vsel %vm1162_vm11, 1, %v1018_v35  ;;  %v1285_v41 = vrot.slane %v1131_v6, %v1227_v31  ;;  %v1289_v42 = vrot.slane %v1133_v7, %v1227_v31 }
  0x39   : > { %vm1172_vm15 = vmor %vm176_vm6, %vm180_vm7  ;;  %vm210_vm6 = vcmp.eq.f32.partialorder %v199_v14, %v1142_v12  ;;  %v193_v37 = vsel %vm1166_vm12, 1, %v1018_v35  ;;  %vm272_vm12 = vcmp.gt.f32.partialorder %v1214_v28, %v1131_v6  ;;  %v1321_v47 = vrot.slane %v1131_v6, %v1230_v32 }
  0x3a   : > { %v2009_v19 = vsel %vm1172_vm15, 4294967295, %v2008_v19  ;;  %vm1177_vm2 = vmor %vm177_vm9, %vm181_vm10  ;;  %vm211_vm9 = vcmp.eq.f32.partialorder %v203_v15, %v1145_v13  ;;  %vm246_vm15 = vcmp.gt.s32.totalorder %v1126_v1, 2  ;;  %v1325_v48 = vrot.slane %v1133_v7, %v1230_v32 }
  0x3b   : > { %v2011_v20 = vsel %vm1177_vm2, 4294967295, %v2010_v20  ;;  %vm214_vm4 = vmand %vm208_vm13, %vm212_vm14  ;;  %vm242_vm2 = vcmp.eq.f32.partialorder %v233_v21, %v1131_v6  ;;  %v1329_v49 = vrot.slane %v1131_v6, %v1233_v33  ;;  %v1338_v51 = vrot.slane %v1133_v7, %v1233_v33 }
  0x3c   : > { %vm215_vm7 = vmand %vm209_vm0, %vm212_vm14  ;;  %vm243_vm0 = vcmp.eq.f32.partialorder %v237_v22, %v1133_v7  ;;  %v1342_v52 = vrot.slane %v1131_v6, %v1243_v34  ;;  %v1346_v53 = vrot.slane %v1133_v7, %v1243_v34  ;;  %v1519_v30 = vrot.slane %v1142_v12, %v1129_v2 }
  0x3d   : > { %vm1194_vm10 = vmor %vm204_vm1, %vm214_vm4  ;;  %vm238_vm4 = vcmp.gt.f32.partialorder %v233_v21, %v1131_v6  ;;  %vm273_vm1 = vcmp.gt.f32.partialorder %v1218_v29, %v1133_v7  ;;  %v1541_v39 = vrot.slane %v1145_v13, %v1129_v2  ;;  %v1557_v2 = vrot.slane %v1142_v12, %v1136_v9 }
  0x3e   : > { %vm1201_vm13 = vmor %vm205_vm3, %vm215_vm7  ;;  %vm277_vm7 = vcmp.eq.f32.partialorder %v1218_v29, %v1133_v7  ;;  %v222_v45 = vsel %vm1194_vm10, 1, %v1018_v35  ;;  %vm2033_vm10 = vcmp.gt.s32.totalorder %v1126_v1, 3  ;;  %v1671_v4 = vrot.slane %v1142_v12, %v1188_v23 }
  0x3f   : > { %vm1207_vm14 = vmor %vm206_vm5, %vm210_vm6  ;;  %vm239_vm5 = vcmp.gt.f32.partialorder %v237_v22, %v1133_v7  ;;  %vm2020_vm6 = vnez %v2009_v19  ;;  %v223_v50 = vsel %vm1201_vm13, 1, %v1018_v35  ;;  %v226_v56 = vadd.s32 %v222_v45, %v192_v36 }
  0x40   : > { %vm1221_vm3 = vmor %vm207_vm8, %vm211_vm9  ;;  %vm244_vm9 = vcmp.eq.f32.partialorder %v233_v21, %v1142_v12  ;;  %v194_v38 = vsel %vm2020_vm6, 1, %v1018_v35  ;;  %vm276_vm6 = vcmp.eq.f32.partialorder %v1214_v28, %v1131_v6  ;;  %v224_v54 = vsel %vm1207_vm14, 1, %v1018_v35 }
  0x41   : > { %vm248_vm8 = vmand %vm242_vm2, %vm246_vm15  ;;  %v225_v55 = vsel %vm1221_vm3, 1, %v1018_v35  ;;  %v227_v58 = vadd.s32 %v223_v50, %v193_v37  ;;  %v228_v61 = vadd.s32 %v224_v54, %v194_v38  ;;  %v1754_v27 = vrot.slane %v1142_v12, %v1230_v32 }
  0x42   : > { %vm249_vm2 = vmand %vm243_vm0, %vm246_vm15  ;;  %vm308_vm15 = vcmp.gt.f32.partialorder %v1285_v41, %v1142_v12 }
  0x43   : > { %vm1263_vm11 = vmor %vm238_vm4, %vm248_vm8  ;;  %vm2026_vm8 = vcmp.gt.f32.partialorder %v233_v21, %v1142_v12  ;;  %vm344_vm4 = vcmp.eq.f32.partialorder %v1321_v47, %v1131_v6 }
  0x44   : > { %vm1275_vm0 = vmor %vm239_vm5, %vm249_vm2  ;;  %vm2025_vm5 = vnez %v2011_v20  ;;  %v256_v59 = vsel %vm1263_vm11, 1, %v1018_v35  ;;  %vm2039_vm11 = vcmp.eq.f32.partialorder %v1214_v28, %v1142_v12 }
  0x45   : > { %v195_v43 = vsel %vm2025_vm5, 1, %v1018_v35  ;;  %vm1298_vm2 = vmor %vm2026_vm8, %vm244_vm9  ;;  %vm2029_vm5 = vcmp.eq.f32.partialorder %v237_v22, %v1145_v13  ;;  %vm2030_vm9 = vcmp.gt.f32.partialorder %v237_v22, %v1145_v13  ;;  %v257_v62 = vsel %vm1275_vm0, 1, %v1018_v35 }
  0x46   : > { %vm1315_vm8 = vmor %vm2030_vm9, %vm2029_vm5  ;;  %v229_v0 = vadd.s32 %v225_v55, %v195_v43  ;;  %v258_v3 = vsel %vm1298_vm2, 1, %v1018_v35  ;;  %vm2043_vm0 = vcmp.eq.f32.partialorder %v1218_v29, %v1145_v13  ;;  %v260_v8 = vadd.s32 %v256_v59, %v226_v56 }
  0x47   : > { %vm282_vm5 = vmand %vm276_vm6, %vm2033_vm10  ;;  %vm306_vm6 = vcmp.gt.f32.partialorder %v1285_v41, %v1131_v6  ;;  %v259_v5 = vsel %vm1315_vm8, 1, %v1018_v35  ;;  %vm2047_vm2 = vcmp.gt.s32.totalorder %v1126_v1, 4  ;;  %v261_v10 = vadd.s32 %v257_v62, %v227_v58 }
  0x48   : > { %vm2034_vm13 = vmmov %vm2033_vm10  ;;  %vm307_vm10 = vcmp.gt.f32.partialorder %v1289_v42, %v1133_v7  ;;  %v262_v14 = vadd.s32 %v258_v3, %v228_v61  ;;  %v263_v18 = vadd.s32 %v259_v5, %v229_v0  ;;  %v1599_v55 = vrot.slane %v1145_v13, %v1158_v16 }
  0x49   : > { %vm283_vm9 = vmand %vm277_vm7, %vm2034_vm13  ;;  %vm310_vm13 = vcmp.eq.f32.partialorder %v1285_v41, %v1131_v6 }
  0x4a   : > { %vm1366_vm14 = vmor %vm272_vm12, %vm282_vm5  ;;  %vm311_vm12 = vcmp.eq.f32.partialorder %v1289_v42, %v1133_v7  ;;  %vm312_vm5 = vcmp.eq.f32.partialorder %v1285_v41, %v1142_v12 }
  0x4b   : > { %vm1380_vm3 = vmor %vm273_vm1, %vm283_vm9  ;;  %vm2040_vm1 = vcmp.gt.f32.partialorder %v1214_v28, %v1142_v12  ;;  %v290_v11 = vsel %vm1366_vm14, 1, %v1018_v35 }
  0x4c   : > { %vm1397_vm9 = vmor %vm2040_vm1, %vm2039_vm11  ;;  %vm2044_vm11 = vcmp.gt.f32.partialorder %v1218_v29, %v1145_v13  ;;  %v291_v15 = vsel %vm1380_vm3, 1, %v1018_v35  ;;  %v294_v22 = vadd.s32 %v290_v11, %v260_v8  ;;  %v1688_v11 = vrot.slane %v1142_v12, %v1227_v31 }
  0x4d   : > { %vm1414_vm1 = vmor %vm2044_vm11, %vm2043_vm0  ;;  %v292_v19 = vsel %vm1397_vm9, 1, %v1018_v35  ;;  %vm378_vm9 = vcmp.eq.f32.partialorder %v1329_v49, %v1131_v6  ;;  %v295_v26 = vadd.s32 %v291_v15, %v261_v10  ;;  %vm2056_vm11 = vcmp.gt.f32.partialorder %v1289_v42, %v1145_v13 }
  0x4e   : > { %vm316_vm0 = vmand %vm310_vm13, %vm2047_vm2  ;;  %vm345_vm13 = vcmp.eq.f32.partialorder %v1325_v48, %v1133_v7  ;;  %v293_v21 = vsel %vm1414_vm1, 1, %v1018_v35  ;;  %vm379_vm1 = vcmp.eq.f32.partialorder %v1338_v51, %v1133_v7  ;;  %v296_v36 = vadd.s32 %v292_v19, %v262_v14 }
  0x4f   : > { %vm2048_vm8 = vmmov %vm2047_vm2  ;;  %vm346_vm2 = vcmp.eq.f32.partialorder %v1321_v47, %v1142_v12  ;;  %v297_v40 = vadd.s32 %v293_v21, %v263_v18  ;;  %v1684_v10 = vrot.slane %v1145_v13, %v1188_v23  ;;  %v1704_v23 = vrot.slane %v1145_v13, %v1227_v31 }
  0x50   : > { %vm317_vm7 = vmand %vm311_vm12, %vm2048_vm8  ;;  %vm347_vm12 = vcmp.eq.f32.partialorder %v1325_v48, %v1145_v13  ;;  %vm408_vm8 = vcmp.gt.f32.partialorder %v1342_v52, %v1131_v6 }
  0x51   : > { %vm1453_vm14 = vmor %vm306_vm6, %vm316_vm0  ;;  %vm409_vm0 = vcmp.gt.f32.partialorder %v1346_v53, %v1133_v7  ;;  %vm2055_vm6 = vcmp.eq.f32.partialorder %v1289_v42, %v1145_v13  ;;  %v1515_v29 = vsel %vm408_vm8, 1, %v1018_v35  ;;  %v1561_v42 = vrot.slane %v1145_v13, %v1136_v9 }
  0x52   : > { %vm1467_vm3 = vmor %vm307_vm10, %vm317_vm7  ;;  %v324_v28 = vsel %vm1453_vm14, 1, %v1018_v35  ;;  %vm380_vm7 = vcmp.eq.f32.partialorder %v1329_v49, %v1142_v12  ;;  %v1537_v38 = vsel %vm409_vm0, 1, %v1018_v35  ;;  %vm442_vm0 = vcmp.gt.f32.partialorder %v1519_v30, %v1131_v6 }
  0x53   : > { %vm1484_vm10 = vmor %vm308_vm15, %vm312_vm5  ;;  %vm376_vm5 = vcmp.gt.f32.partialorder %v1329_v49, %v1142_v12  ;;  %v325_v37 = vsel %vm1467_vm3, 1, %v1018_v35  ;;  %v328_v44 = vadd.s32 %v324_v28, %v294_v22  ;;  %v1577_v9 = vrot.slane %v1142_v12, %v1158_v16 }
  0x54   : > { %vm1500_vm15 = vmor %vm2056_vm11, %vm2055_vm6  ;;  %vm2059_vm11 = vcmp.gt.s32.totalorder %v1126_v1, 5  ;;  %v326_v41 = vsel %vm1484_vm10, 1, %v1018_v35  ;;  %v329_v45 = vadd.s32 %v325_v37, %v295_v26  ;;  %v460_v58 = vsel %vm442_vm0, 1, %v1018_v35 }
  0x55   : > { %vm350_vm14 = vmand %vm344_vm4, %vm2059_vm11  ;;  %v327_v43 = vsel %vm1500_vm15, 1, %v1018_v35  ;;  %vm2062_vm15 = vcmp.gt.f32.partialorder %v1325_v48, %v1133_v7  ;;  %v330_v50 = vadd.s32 %v326_v41, %v296_v36  ;;  %vm2068_vm0 = vcmp.gt.f32.partialorder %v1338_v51, %v1133_v7 }
  0x56   : > { %vm2060_vm4 = vmmov %vm2059_vm11  ;;  %vm2063_vm11 = vcmp.gt.f32.partialorder %v1321_v47, %v1142_v12  ;;  %v331_v56 = vadd.s32 %v327_v43, %v297_v40  ;;  %v1767_v36 = vrot.slane %v1145_v13, %v1230_v32 }
  0x57   : > { %vm351_vm3 = vmand %vm345_vm13, %vm2060_vm4  ;;  %vm2061_vm13 = vcmp.gt.f32.partialorder %v1321_v47, %v1131_v6 }
  0x58   : > { %vm354_vm10 = vmor %vm2061_vm13, %vm350_vm14  ;;  %vm443_vm14 = vcmp.gt.f32.partialorder %v1541_v39, %v1133_v7  ;;  %vm2065_vm13 = vcmp.gt.s32.totalorder %v1126_v1, 6 }
  0x59   : > { %vm355_vm6 = vmor %vm2062_vm15, %vm351_vm3  ;;  %v358_v46 = vsel %vm354_vm10, 1, %v1018_v35  ;;  %vm476_vm3 = vcmp.gt.f32.partialorder %v1557_v2, %v1131_v6  ;;  %vm2064_vm10 = vcmp.gt.f32.partialorder %v1325_v48, %v1145_v13  ;;  %v461_v59 = vsel %vm443_vm14, 1, %v1018_v35 }
  0x5a   : > { %vm356_vm8 = vmor %vm2063_vm11, %vm346_vm2  ;;  %v359_v54 = vsel %vm355_vm6, 1, %v1018_v35  ;;  %vm477_vm6 = vcmp.gt.f32.partialorder %v1561_v42, %v1133_v7  ;;  %vm510_vm11 = vcmp.gt.f32.partialorder %v1577_v9, %v1131_v6  ;;  %v362_v57 = vadd.s32 %v358_v46, %v328_v44 }
  0x5b   : > { %vm357_vm15 = vmor %vm2064_vm10, %vm347_vm12  ;;  %v360_v47 = vsel %vm356_vm8, 1, %v1018_v35  ;;  %vm449_vm10 = vcmp.eq.f32.partialorder %v1541_v39, %v1145_v13  ;;  %vm511_vm2 = vcmp.gt.f32.partialorder %v1599_v55, %v1133_v7  ;;  %v363_v48 = vadd.s32 %v359_v54, %v329_v45 }
  0x5c   : > { %v361_v16 = vsel %vm357_vm15, 1, %v1018_v35  ;;  %vm384_vm12 = vmand %vm378_vm9, %vm2065_vm13  ;;  %vm482_vm9 = vcmp.eq.f32.partialorder %v1557_v2, %v1142_v12  ;;  %v364_v1 = vadd.s32 %v360_v47, %v330_v50  ;;  %vm2067_vm8 = vcmp.gt.f32.partialorder %v1329_v49, %v1131_v6 }
  0x5d   : > { %vm2066_vm4 = vmmov %vm2065_vm13  ;;  %vm485_vm13 = vcmp.gt.s32.totalorder %v1199_v25, 9  ;;  %v494_v60 = vsel %vm476_vm3, 1, %v1018_v35  ;;  %v495_v61 = vsel %vm477_vm6, 1, %v1018_v35  ;;  %v528_v62 = vsel %vm510_vm11, 1, %v1018_v35 }
  0x5e   : > { %vm385_vm15 = vmand %vm379_vm1, %vm2066_vm4  ;;  %vm483_vm4 = vcmp.eq.f32.partialorder %v1561_v42, %v1145_v13  ;;  %v365_v63 = vadd.s32 %v361_v16, %v331_v56  ;;  %vm478_vm3 = vcmp.gt.f32.partialorder %v1557_v2, %v1142_v12  ;;  %v529_v3 = vsel %vm511_vm2, 1, %v1018_v35 }
  0x5f   : > { %vm388_vm1 = vmor %vm2067_vm8, %vm384_vm12  ;;  %vm2069_vm2 = vcmp.eq.f32.partialorder %v1338_v51, %v1145_v13  ;;  %vm2076_vm8 = vcmp.eq.f32.partialorder %v1519_v30, %v1142_v12  ;;  %v1796_v44 = vrot.slane %v1145_v13, %v1233_v33 }
  0x60   : > { %vm389_vm14 = vmor %vm2068_vm0, %vm385_vm15  ;;  %v392_v0 = vsel %vm388_vm1, 1, %v1018_v35  ;;  %vm544_vm15 = vcmp.gt.f32.partialorder %v1671_v4, %v1131_v6  ;;  %vm2071_vm1 = vcmp.eq.f32.partialorder %v1342_v52, %v1142_v12  ;;  %vm2072_vm0 = vcmp.gt.f32.partialorder %v1342_v52, %v1142_v12 }
  0x61   : > { %vm390_vm6 = vmor %vm376_vm5, %vm380_vm7  ;;  %v393_v5 = vsel %vm389_vm14, 1, %v1018_v35  ;;  %v396_v8 = vadd.s32 %v392_v0, %v362_v57  ;;  %vm2070_vm7 = vcmp.gt.f32.partialorder %v1338_v51, %v1145_v13  ;;  %v562_v21 = vsel %vm544_vm15, 1, %v1018_v35 }
  0x62   : > { %vm391_vm5 = vmor %vm2070_vm7, %vm2069_vm2  ;;  %v394_v49 = vsel %vm390_vm6, 1, %v1018_v35  ;;  %v397_v14 = vadd.s32 %v393_v5, %v363_v48  ;;  %vm545_vm2 = vcmp.gt.f32.partialorder %v1684_v10, %v1133_v7  ;;  %vm2073_vm7 = vcmp.eq.f32.partialorder %v1346_v53, %v1145_v13 }
  0x63   : > { %v395_v15 = vsel %vm391_vm5, 1, %v1018_v35  ;;  %v398_v17 = vadd.s32 %v394_v49, %v364_v1  ;;  %vm424_vm14 = vmor %vm2072_vm0, %vm2071_vm1  ;;  %v430_v51 = vadd.s32 %v1515_v29, %v396_v8  ;;  %vm2074_vm5 = vcmp.gt.f32.partialorder %v1346_v53, %v1145_v13 }
  0x64   : > { %v399_v31 = vadd.s32 %v395_v15, %v365_v63  ;;  %vm425_vm12 = vmor %vm2074_vm5, %vm2073_vm7  ;;  %v428_v18 = vsel %vm424_vm14, 1, %v1018_v35  ;;  %v431_v52 = vadd.s32 %v1537_v38, %v397_v14  ;;  %vm512_vm1 = vcmp.gt.f32.partialorder %v1577_v9, %v1142_v12 }
  0x65   : > { %vm578_vm0 = vcmp.gt.f32.partialorder %v1688_v11, %v1131_v6  ;;  %v429_v19 = vsel %vm425_vm12, 1, %v1018_v35  ;;  %v432_v20 = vadd.s32 %v428_v18, %v398_v17  ;;  %vm2075_vm6 = vcmp.gt.s32.totalorder %v1199_v25, 8 }
  0x66   : > { %vm454_vm11 = vmand %vm2076_vm8, %vm2075_vm6  ;;  %v464_v53 = vadd.s32 %v460_v58, %v430_v51  ;;  %vm513_vm14 = vcmp.gt.f32.partialorder %v1599_v55, %v1145_v13  ;;  %v433_v22 = vadd.s32 %v429_v19, %v399_v31  ;;  %v465_v24 = vadd.s32 %v461_v59, %v431_v52 }
  0x67   : > { %vm2077_vm7 = vmmov %vm2075_vm6  ;;  %vm553_vm5 = vcmp.gt.s32.totalorder %v1199_v25, 11  ;;  %v563_v26 = vsel %vm545_vm2, 1, %v1018_v35  ;;  %vm2078_vm8 = vcmp.gt.f32.partialorder %v1519_v30, %v1142_v12  ;;  %v596_v29 = vsel %vm578_vm0, 1, %v1018_v35 }
  0x68   : > { %vm455_vm12 = vmand %vm449_vm10, %vm2077_vm7  ;;  %v498_v28 = vadd.s32 %v494_v60, %v464_v53  ;;  %vm579_vm10 = vcmp.gt.f32.partialorder %v1704_v23, %v1133_v7  ;;  %vm2079_vm6 = vcmp.gt.f32.partialorder %v1541_v39, %v1145_v13  ;;  %v499_v37 = vadd.s32 %v495_v61, %v465_v24 }
  0x69   : > { %vm458_vm15 = vmor %vm2078_vm8, %vm454_vm11  ;;  %vm546_vm11 = vcmp.gt.f32.partialorder %v1671_v4, %v1142_v12  ;;  %vm612_vm7 = vcmp.gt.f32.partialorder %v1754_v27, %v1131_v6  ;;  %v1779_v38 = vrot.slane %v1142_v12, %v1233_v33  ;;  %v597_v46 = vsel %vm579_vm10, 1, %v1018_v35 }
  0x6a   : > { %vm459_vm2 = vmor %vm2079_vm6, %vm455_vm12  ;;  %v462_v30 = vsel %vm458_vm15, 1, %v1018_v35  ;;  %v532_v39 = vadd.s32 %v528_v62, %v498_v28  ;;  %vm613_vm12 = vcmp.gt.f32.partialorder %v1767_v36, %v1133_v7  ;;  %v533_v43 = vadd.s32 %v529_v3, %v499_v37 }
  0x6b   : > { %v463_v32 = vsel %vm459_vm2, 1, %v1018_v35  ;;  %v466_v40 = vadd.s32 %v462_v30, %v432_v20  ;;  %vm488_vm0 = vmand %vm482_vm9, %vm485_vm13  ;;  %vm646_vm15 = vcmp.gt.f32.partialorder %v1779_v38, %v1131_v6  ;;  %vm550_vm6 = vcmp.eq.f32.partialorder %v1671_v4, %v1142_v12 }
  0x6c   : > { %v467_v41 = vadd.s32 %v463_v32, %v433_v22  ;;  %vm489_vm8 = vmand %vm483_vm4, %vm485_vm13  ;;  %v566_v45 = vadd.s32 %v562_v21, %v532_v39  ;;  %v630_v33 = vsel %vm612_vm7, 1, %v1018_v35  ;;  %vm2080_vm13 = vcmp.gt.f32.partialorder %v1561_v42, %v1145_v13 }
  0x6d   : > { %vm492_vm9 = vmor %vm478_vm3, %vm488_vm0  ;;  %v567_v50 = vadd.s32 %v563_v26, %v533_v43  ;;  %v631_v54 = vsel %vm613_vm12, 1, %v1018_v35  ;;  %vm647_vm3 = vcmp.gt.f32.partialorder %v1796_v44, %v1133_v7  ;;  %vm2081_vm10 = vcmp.gt.s32.totalorder %v1199_v25, 10 }
  0x6e   : > { %vm493_vm4 = vmor %vm2080_vm13, %vm489_vm8  ;;  %v496_v2 = vsel %vm492_vm9, 1, %v1018_v35  ;;  %vm2082_vm2 = vcmp.eq.f32.partialorder %v1577_v9, %v1142_v12  ;;  %v600_v16 = vadd.s32 %v596_v29, %v566_v45  ;;  %v664_v42 = vsel %vm646_vm15, 1, %v1018_v35 }
  0x6f   : > { %v497_v56 = vsel %vm493_vm4, 1, %v1018_v35  ;;  %v500_v47 = vadd.s32 %v496_v2, %v466_v40  ;;  %vm522_vm7 = vmand %vm2082_vm2, %vm2081_vm10  ;;  %vm2084_vm12 = vcmp.eq.f32.partialorder %v1599_v55, %v1145_v13  ;;  %v601_v48 = vadd.s32 %v597_v46, %v567_v50 }
  0x70   : > { %v501_v57 = vadd.s32 %v497_v56, %v467_v41  ;;  %vm2083_vm0 = vmmov %vm2081_vm10  ;;  %v1834_v58 = vrot.slane %v1142_v12, %v1243_v34  ;;  %v1838_v59 = vrot.slane %v1145_v13, %v1243_v34  ;;  %vm547_vm9 = vcmp.gt.f32.partialorder %v1684_v10, %v1145_v13 }
  0x71   : > { %vm523_vm8 = vmand %vm2084_vm12, %vm2083_vm0  ;;  %vm551_vm13 = vcmp.eq.f32.partialorder %v1684_v10, %v1145_v13  ;;  %v634_v1 = vadd.s32 %v630_v33, %v600_v16  ;;  %v665_v60 = vsel %vm647_vm3, 1, %v1018_v35  ;;  %v635_v61 = vadd.s32 %v631_v54, %v601_v48 }
  0x72   : > { %vm526_vm15 = vmor %vm512_vm1, %vm522_vm7  ;;  %vm680_vm10 = vcmp.gt.f32.partialorder %v1834_v58, %v1131_v6  ;;  %vm681_vm1 = vcmp.gt.f32.partialorder %v1838_v59, %v1133_v7  ;;  %vm587_vm7 = vcmp.gt.s32.totalorder %v1199_v25, 12 }
  0x73   : > { %vm527_vm4 = vmor %vm513_vm14, %vm523_vm8  ;;  %v530_v34 = vsel %vm526_vm15, 1, %v1018_v35  ;;  %vm584_vm14 = vcmp.eq.f32.partialorder %v1688_v11, %v1142_v12  ;;  %v668_v55 = vadd.s32 %v664_v42, %v634_v1  ;;  %v669_v0 = vadd.s32 %v665_v60, %v635_v61 }
  0x74   : > { %v531_v9 = vsel %vm527_vm4, 1, %v1018_v35  ;;  %v534_v62 = vadd.s32 %v530_v34, %v500_v47  ;;  %vm556_vm3 = vmand %vm550_vm6, %vm553_vm5  ;;  %v698_v3 = vsel %vm680_vm10, 1, %v1018_v35  ;;  %vm585_vm6 = vcmp.eq.f32.partialorder %v1704_v23, %v1145_v13 }
  0x75   : > { %v535_v63 = vadd.s32 %v531_v9, %v501_v57  ;;  %vm557_vm2 = vmand %vm551_vm13, %vm553_vm5  ;;  %v699_v5 = vsel %vm681_vm1, 1, %v1018_v35  ;;  %v702_v8 = vadd.s32 %v698_v3, %v668_v55  ;;  %vm580_vm5 = vcmp.gt.f32.partialorder %v1688_v11, %v1142_v12 }
  0x76   : > { %vm560_vm0 = vmor %vm546_vm11, %vm556_vm3  ;;  %vm581_vm8 = vcmp.gt.f32.partialorder %v1704_v23, %v1145_v13  ;;  %v703_v4 = vadd.s32 %v699_v5, %v669_v0  ;;  %vm621_vm15 = vcmp.gt.s32.totalorder %v1199_v25, 13  ;;  %vm618_vm4 = vcmp.eq.f32.partialorder %v1754_v27, %v1142_v12 }
  0x77   : > { %vm561_vm12 = vmor %vm547_vm9, %vm557_vm2  ;;  %v564_v49 = vsel %vm560_vm0, 1, %v1018_v35  ;;  %vm706_vm9 = vcmp.lt.s32.totalorder %v702_v8, 10  ;;  %vm619_vm3 = vcmp.eq.f32.partialorder %v1767_v36, %v1145_v13  ;;  %vm614_vm2 = vcmp.gt.f32.partialorder %v1754_v27, %v1142_v12 }
  0x78   : > { %v565_v14 = vsel %vm561_vm12, 1, %v1018_v35  ;;  %v568_v15 = vadd.s32 %v564_v49, %v534_v62  ;;  %vm590_vm11 = vmand %vm584_vm14, %vm587_vm7  ;;  %vm707_vm10 = vcmp.lt.s32.totalorder %v703_v4, 10  ;;  %v710_v17 = vsel %vm706_vm9, %v1131_v6, 0.0 }
  0x79   : > { %v569_v10 = vadd.s32 %v565_v14, %v535_v63  ;;  %vm591_vm13 = vmand %vm585_vm6, %vm587_vm7  ;;  %v711_v11 = vsel %vm707_vm10, %v1133_v7, 0.0  ;;  %714 = vst [vmem:[%s1899_s18] sm:$0xff] %v710_v17  ;;  %vm615_vm7 = vcmp.gt.f32.partialorder %v1767_v36, %v1145_v13  ;;  %vm652_vm12 = vcmp.eq.f32.partialorder %v1779_v38, %v1142_v12 }
  0x7a   : > { %vm594_vm1 = vmor %vm580_vm5, %vm590_vm11  ;;  %715 = vst [vmem:[%s1899_s18 + $0x8] sm:$0xff] %v711_v11  ;;  %vm655_vm5 = vcmp.gt.s32.totalorder %v1199_v25, 14  ;;  %vm653_vm11 = vcmp.eq.f32.partialorder %v1796_v44, %v1145_v13  ;;  %vm682_vm10 = vcmp.gt.f32.partialorder %v1834_v58, %v1142_v12 }
  0x7b   : > { %vm595_vm14 = vmor %vm581_vm8, %vm591_vm13  ;;  %v598_v51 = vsel %vm594_vm1, 1, %v1018_v35  ;;  %vm648_vm13 = vcmp.gt.f32.partialorder %v1779_v38, %v1142_v12  ;;  %v700_v20 = vsel %vm682_vm10, 1, %v1018_v35 }
  0x7c   : > { %v599_v6 = vsel %vm595_vm14, 1, %v1018_v35  ;;  %v602_v31 = vadd.s32 %v598_v51, %v568_v15  ;;  %vm624_vm0 = vmand %vm618_vm4, %vm621_vm15 }
  0x7d   : > { %v603_v7 = vadd.s32 %v599_v6, %v569_v10  ;;  %vm625_vm6 = vmand %vm619_vm3, %vm621_vm15  ;;  %vm649_vm15 = vcmp.gt.f32.partialorder %v1796_v44, %v1145_v13  ;;  %vm683_vm3 = vcmp.gt.f32.partialorder %v1838_v59, %v1145_v13 }
  0x7e   : > { %vm628_vm8 = vmor %vm614_vm2, %vm624_vm0  ;;  %v701_v22 = vsel %vm683_vm3, 1, %v1018_v35 }
  0x7f   : > { %vm629_vm9 = vmor %vm615_vm7, %vm625_vm6  ;;  %v632_v23 = vsel %vm628_vm8, 1, %v1018_v35 }
  0x80   : > { %v633_v18 = vsel %vm629_vm9, 1, %v1018_v35  ;;  %v636_v52 = vadd.s32 %v632_v23, %v602_v31  ;;  %vm658_vm4 = vmand %vm652_vm12, %vm655_vm5 }
  0x81   : > { %v637_v25 = vadd.s32 %v633_v18, %v603_v7  ;;  %vm659_vm1 = vmand %vm653_vm11, %vm655_vm5 }
  0x82   : > { %vm662_vm14 = vmor %vm648_vm13, %vm658_vm4 }
  0x83   : > { %vm663_vm2 = vmor %vm649_vm15, %vm659_vm1  ;;  %v666_v19 = vsel %vm662_vm14, 1, %v1018_v35 }
  0x84   : > { %v667_v53 = vsel %vm663_vm2, 1, %v1018_v35  ;;  %v670_v21 = vadd.s32 %v666_v19, %v636_v52 }
  0x85   : > { %v671_v24 = vadd.s32 %v667_v53, %v637_v25 }
  0x86   : > { %v704_v26 = vadd.s32 %v700_v20, %v670_v21 }
  0x87   : > { %v705_v27 = vadd.s32 %v701_v22, %v671_v24 }
  0x88   : > { %vm708_vm7 = vcmp.lt.s32.totalorder %v704_v26, 10 }
  0x89   : > { %vm709_vm0 = vcmp.lt.s32.totalorder %v705_v27, 10  ;;  %v712_v35 = vsel %vm708_vm7, %v1142_v12, 0.0 }
  0x8a   : > { %v713_v28 = vsel %vm709_vm0, %v1145_v13, 0.0  ;;  %716 = vst [vmem:[%s1899_s18 + $0x10] sm:$0xff] %v712_v35 }
  0x8b   : > { %717 = vst [vmem:[%s1899_s18 + $0x18] sm:$0xff] %v713_v28 }
  0x8c   : > { %946 = shalt.err (!%p943_p6)
}
  0x8d   : > { %s947_s4 = scalar_lea.hbm %s1943_s28, 512  ;;  %s951_s13 = scalar_lea.hbm %s1998_s1, 1024 }
  0x8e   : > { %p948_p7 = scmp.ne.s32.totalorder %s1943_s28, %s947_s4  ;;  %p952_p13 = scmp.lt.s32.totalorder %s1943_s28, %s1998_s1 }
  0x8f   : > { %p953_p2 = scmp.lt.s32.totalorder %s951_s13, %s947_s4 }
  0x90   : > { %p949_p10 = pnand %p948_p7, %p1083_p9 }
  0x91   : > { %p954_p8 = por %p953_p2, %p952_p13 }
  0x92   : > { %p950_p4 = pneg %p949_p10 }
  0x94   : > { %p955_p12 = pnand %p954_p8, %p950_p4 }
  0x96   : > { %958 = shalt.err (!%p955_p12)
}
  0x97   : > { %s1020_s22 = smov 256   ;;  %s1021_s23 = smov 16  }
  0x98   : > { %840 = dma.vmem_to_hbm [thread:$0]  (%p1083_p9), %s1945_s25, 512, %s1943_s28, %s719_s9, %s1020_s22, %s1020_s22, %s1021_s23  }
  0x99 PF: > { %s749_s18 = sand.u32 1, %s993_s6   ;;  %p2085_p0 = scmp.ge.s32.totalorder %s1013_s11, 2 }
  0x9a   : > { %s750_s24 = scalar_lea.sflag [#allocation4], %s749_s18 }
  0x9b   : > { %p847_p1 = pnand %p2085_p0, %p1090_p11 }
  0x9d   : > { %p848_p3 = pneg %p847_p1 }
  0x9f   : > { %988 = dma.done.wait (%p848_p3), %s750_s24, 512  }
  0xa0   : > { %990 = vsyncadd (%p848_p3), %s750_s24, 4294966784  ;;  %s17_s11 = sadd.s32 1, %s1013_s11   ;;  %s2086_s6 = smov %s997_s7 }
  0xa1   : > { %p14_p5 = scmp.ge.s32.totalorder %s17_s11, 4   ;;  %s2087_s7 = smov %s1001_s8 }
  0xa2   : > { %s2088_s8 = smov %s1088_s20  ;;  %s2089_s9 = smov %s1009_s10 }
  0xa3   : > { %s2090_s10 = smov %s2092_s14  ;;  %16 = sbr.rel (!%p14_p5) target bundleno = 6 (0x6), region = 69 }
  0xa8   :  { %755 = vsyncpa [#allocation3], 1 }
  0xa9   :  { %757 = vsyncpa [#allocation3 + $0x1], 1 }
  0xaa   :  { %758 = vsyncpa [#allocation4], 1 }
  0xab   :  { %760 = vsyncpa [#allocation4 + $0x1], 1 }

</bundles_post_ra>
